<compile_context>
chip_gen: v7x
topology: tpu7x:2x2x1
jax: 0.10.0
libtpu: 0.0.40
codegen_flags: <defaults>
</compile_context>

<pallas_src>
import functools

import jax
import jax.numpy as jnp
from jax import lax
from jax.experimental import pallas as pl
from jax.experimental.pallas import tpu as pltpu


def _l1_masked_kernel(x_ref, t_ref, abs_out, cnt_out, acc_abs, acc_cnt, *,
                      n_tiles, tiles_per_half, block_rows, chunk_rows,
                      acc_rows, lane, rows, needs_row_mask):
    c = pl.program_id(0)          # TensorCore half (trivial size-1 axis on 1-TC chips)
    i = pl.program_id(1)          # tile index within the half (sequential reduction)
    n_chunks = block_rows // chunk_rows

    @pl.when(i == 0)
    def _():
        acc_abs[...] = jnp.zeros_like(acc_abs)
        acc_cnt[...] = jnp.zeros_like(acc_cnt)

    # Global tile id, deliberately NOT clamped, so phantom / partial tiles are
    # detected and masked (the index_map clamp only keeps the DMA in range).
    g = c * tiles_per_half + i

    def accumulate_chunk(row0, masked):
        if isinstance(row0, int) and chunk_rows == block_rows:
            x = x_ref[...]
            t = t_ref[...]
        else:
            x = x_ref[pl.ds(row0, chunk_rows), :]
            t = t_ref[pl.ds(row0, chunk_rows), :]
        x = x.astype(jnp.float32)
        t = t.astype(jnp.float32)
        valid = t != 0.0
        if masked:
            rid = (g * block_rows + row0) + lax.broadcasted_iota(
                jnp.int32, (chunk_rows, lane), 0)
            valid = jnp.logical_and(valid, rid < rows)
        a = jnp.where(valid, jnp.abs(x - t), 0.0)   # NaN-safe masking
        m = valid.astype(jnp.float32)
        if chunk_rows > acc_rows:
            # Fold sublane groups onto each other: pure VALU vreg-adds.
            a = jnp.sum(a.reshape(chunk_rows // acc_rows, acc_rows, lane), axis=0)
            m = jnp.sum(m.reshape(chunk_rows // acc_rows, acc_rows, lane), axis=0)
        acc_abs[...] += a
        acc_cnt[...] += m

    def run_tile(masked):
        if n_chunks == 1:
            accumulate_chunk(0, masked)
        else:
            @pl.loop(0, n_chunks)
            def _(s):
                row0 = pl.multiple_of(s * chunk_rows, 8)
                accumulate_chunk(row0, masked)

    if needs_row_mask:
        # Only the last real tile (partial rows) and phantom tiles need the
        # iota/compare/and work; interior tiles take the cheap path.
        is_interior = g < (n_tiles - 1)

        @pl.when(is_interior)
        def _():
            run_tile(False)

        @pl.when(jnp.logical_not(is_interior))
        def _():
            run_tile(True)
    else:
        run_tile(False)

    @pl.when(i == tiles_per_half - 1)
    def _():
        abs_out[...] = jnp.full(abs_out.shape, jnp.sum(acc_abs[...]),
                                dtype=jnp.float32)
        cnt_out[...] = jnp.full(cnt_out.shape, jnp.sum(acc_cnt[...]),
                                dtype=jnp.float32)


def _choose_lane(n_elems, natural_w):
    for lane in (1024, 512, 256, 128):
        if n_elems % lane == 0:
            return lane
    return max(natural_w, 1)   # natural last dim always divides n_elems


def _tensorcores_per_device():
    """JAX devices spanning two TensorCores: v4, v5p, v7x. v5e/v6e (and v2/v3
    per-core devices) are single-TC."""
    try:
        kind = jax.devices()[0].device_kind.lower().replace(" ", "")
    except Exception:
        return 1
    if any(tag in kind for tag in ("v5lite", "v5e", "v6", "v2", "v3")):
        return 1
    if any(tag in kind for tag in ("v4", "v5p", "v7", "7x")):
        return 2
    return 1


@functools.partial(jax.jit, static_argnames=("target_tile_bytes",))
def l1_masked_loss_depth(inp, target, *, target_tile_bytes=None):
    # Mirror torch's .squeeze(): drop all size-1 dims (shapes are static).
    inp = jnp.squeeze(inp)
    target = jnp.squeeze(target)
    assert inp.shape == target.shape

    n = int(inp.size)
    natural_w = inp.shape[-1] if inp.ndim else 1
    lane = _choose_lane(n, natural_w)
    rows = n // lane

    # Contiguous reshapes only -- no padded HBM copy of the inputs.
    x2d = inp.reshape(rows, lane)
    t2d = target.reshape(rows, lane)

    itemsize = int(x2d.dtype.itemsize)
    # Native sublane packing quantum: 8 rows (f32), 16 (bf16), 32 (int8/fp8).
    sub_q = max(8, 32 // max(itemsize, 1))

    num_tc = _tensorcores_per_device()
    if target_tile_bytes is None:
        # 2 inputs x 2 pipeline buffers x tile must fit the per-core budget
        # (v7x: 64 MiB/TC -> ~10 MiB tiles; v5e/v6e: 128 MiB -> ~16 MiB tiles).
        target_tile_bytes = (10 << 20) if num_tc > 1 else (16 << 20)
    target_tile_bytes = int(target_tile_bytes)

    if rows <= sub_q:
        block_rows = rows
        chunk_rows = rows
        acc_rows = rows
    else:
        # Inner compute chunk: ~256 KiB of input per iteration keeps all
        # elementwise intermediates small while the grid tile stays large.
        max_chunk = max(sub_q,
                        ((256 * 1024) // (lane * itemsize)) // sub_q * sub_q)
        chunk_rows = min(max_chunk, (rows // sub_q) * sub_q)
        br = max(chunk_rows,
                 (target_tile_bytes // (lane * itemsize)) // chunk_rows * chunk_rows)
        block_rows = min(br, (rows // chunk_rows) * chunk_rows)
        acc_rows = 8

    n_tiles = pl.cdiv(rows, block_rows)
    # Split across TensorCores only when there is more than one tile; on
    # single-TC chips (and tiny inputs) use a single half -> no phantom tiles.
    num_halves = num_tc if n_tiles >= 2 else 1
    tiles_per_half = pl.cdiv(n_tiles, num_halves)
    needs_row_mask = (num_halves * tiles_per_half * block_rows) != rows

    def in_map(c, i):
        # Clamp so phantom tiles (odd tile count on 2-TC split) re-read a valid
        # block; those rows are zeroed by the in-kernel row mask.
        return (jnp.minimum(c * tiles_per_half + i, n_tiles - 1), 0)

    kernel = functools.partial(
        _l1_masked_kernel,
        n_tiles=n_tiles,
        tiles_per_half=tiles_per_half,
        block_rows=block_rows,
        chunk_rows=chunk_rows,
        acc_rows=acc_rows,
        lane=lane,
        rows=rows,
        needs_row_mask=needs_row_mask,
    )

    tile_bytes = block_rows * lane * itemsize
    acc_bytes = 2 * acc_rows * lane * 4
    vmem_need = 4 * tile_bytes + acc_bytes + (8 << 20)      # DMA bufs + headroom
    vmem_cap = (56 << 20) if num_tc > 1 else (100 << 20)    # v7x 64MiB/TC vs 128MiB
    vmem_limit = int(min(max(vmem_need, 32 << 20), vmem_cap))

    abs_part, cnt_part = pl.pallas_call(
        kernel,
        out_shape=(
            jax.ShapeDtypeStruct((num_halves, 8, 128), jnp.float32),
            jax.ShapeDtypeStruct((num_halves, 8, 128), jnp.float32),
        ),
        grid_spec=pltpu.PrefetchScalarGridSpec(
            num_scalar_prefetch=0,
            grid=(num_halves, tiles_per_half),
            in_specs=[
                pl.BlockSpec((block_rows, lane), in_map),
                pl.BlockSpec((block_rows, lane), in_map),
            ],
            out_specs=[
                pl.BlockSpec((1, 8, 128), lambda c, i: (c, 0, 0)),
                pl.BlockSpec((1, 8, 128), lambda c, i: (c, 0, 0)),
            ],
            scratch_shapes=[
                pltpu.VMEM((acc_rows, lane), jnp.float32),
                pltpu.VMEM((acc_rows, lane), jnp.float32),
            ],
        ),
        compiler_params=pltpu.CompilerParams(
            dimension_semantics=("parallel", "arbitrary"),
            vmem_limit_bytes=vmem_limit,
        ),
    )(x2d, t2d)

    abs_total = jnp.sum(abs_part[:, 0, 0])
    cnt_total = jnp.sum(cnt_part[:, 0, 0])
    return abs_total / (cnt_total + jnp.float32(1e-12))


def _reference(inp, target):
    inp = jnp.squeeze(inp).astype(jnp.float32)
    target = jnp.squeeze(target).astype(jnp.float32)
    mask = (target != 0.0).astype(jnp.float32)
    return jnp.sum(jnp.abs(inp * mask - target * mask)) / (jnp.sum(mask) + 1e-12)


if __name__ == "__main__":
    root = jax.random.PRNGKey(0)

    def make_inputs(key, shape, dtype, hole_frac):
        k1, k2, k3 = jax.random.split(key, 3)
        x = jax.random.normal(k1, shape, dtype=jnp.float32).astype(dtype)
        t = jax.random.normal(k2, shape, dtype=jnp.float32).astype(dtype)
        holes = jax.random.uniform(k3, shape) < hole_frac
        t = jnp.where(holes, 0.0, t).astype(dtype)
        return x, t

    # (name, NCHW shape, dtype, hole fraction, rtol, atol)
    cases = [
        ("f32_small", (2, 1, 16, 16), jnp.float32, 0.3, 1e-5, 1e-6),
        ("f32_tiled", (10, 1, 128, 128), jnp.float32, 0.3, 1e-4, 1e-6),   # multi-tile + chunked + partial tile
        ("bf16_tiled", (6, 1, 64, 64), jnp.bfloat16, 0.3, 1e-3, 1e-5),    # bf16 packing path + partial tile
    ]

    for idx, (name, shape, dtype, frac, rtol, atol) in enumerate(cases):
        x, t = make_inputs(jax.random.fold_in(root, idx), shape, dtype, frac)
        loss = jax.block_until_ready(l1_masked_loss_depth(x, t))
        ref = jax.block_until_ready(_reference(x, t))
        assert jnp.allclose(loss, ref, rtol=rtol, atol=atol), (name, loss, ref)

    print("KERNEL_OK")
</pallas_src>

<mosaic_0001>
module attributes {stable_mosaic.version = 11 : i64} {
  func.func @_l1_masked_kernel(%arg0: i32, %arg1: i32, %arg2: memref<1x512xf32, #tpu.memory_space<vmem>>, %arg3: memref<1x512xf32, #tpu.memory_space<vmem>>, %arg4: memref<1x8x128xf32, #tpu.memory_space<vmem>>, %arg5: memref<1x8x128xf32, #tpu.memory_space<vmem>>, %arg6: memref<1x512xf32, #tpu.memory_space<vmem>>, %arg7: memref<1x512xf32, #tpu.memory_space<vmem>>) attributes {dimension_semantics = [#tpu.dimension_semantics<parallel>, #tpu.dimension_semantics<arbitrary>], iteration_bounds = array<i64: 1, 1>, scalar_prefetch = 0 : i64, scratch_operands = 2 : i64, tpu.core_type = #tpu.core_type<tc>, window_params = [{transform_indices = @transform_0, window_bounds = array<i64: 1, 512>}, {transform_indices = @transform_1, window_bounds = array<i64: 1, 512>}, {transform_indices = @transform_2, window_bounds = array<i64: 1, 8, 128>}, {transform_indices = @transform_3, window_bounds = array<i64: 1, 8, 128>}]} {
    %c0_i32 = arith.constant 0 : i32
    %0 = arith.cmpi eq, %arg1, %c0_i32 : i32
    %1 = arith.extui %0 : i1 to i32
    %c0_i32_0 = arith.constant 0 : i32
    %2 = arith.cmpi ne, %1, %c0_i32_0 : i32
    scf.if %2 {
      %cst_15 = arith.constant 0.000000e+00 : f32
      %22 = vector.broadcast %cst_15 : f32 to vector<1x512xf32>
      %c0_16 = arith.constant 0 : index
      %c0_17 = arith.constant 0 : index
      %23 = vector.load %arg6[%c0_16, %c0_17] : memref<1x512xf32, #tpu.memory_space<vmem>>, vector<1x512xf32>
      tpu.vector_store %arg6[%c0_16, %c0_17], %22 {strides = array<i32>} : memref<1x512xf32, #tpu.memory_space<vmem>>, vector<1x512xf32>,
      %cst_18 = arith.constant 0.000000e+00 : f32
      %24 = vector.broadcast %cst_18 : f32 to vector<1x512xf32>
      %c0_19 = arith.constant 0 : index
      %c0_20 = arith.constant 0 : index
      %25 = vector.load %arg7[%c0_19, %c0_20] : memref<1x512xf32, #tpu.memory_space<vmem>>, vector<1x512xf32>
      tpu.vector_store %arg7[%c0_19, %c0_20], %24 {strides = array<i32>} : memref<1x512xf32, #tpu.memory_space<vmem>>, vector<1x512xf32>,
    } else {
    }
    %c0 = arith.constant 0 : index
    %c0_1 = arith.constant 0 : index
    %3 = vector.load %arg2[%c0, %c0_1] : memref<1x512xf32, #tpu.memory_space<vmem>>, vector<1x512xf32>
    %c0_2 = arith.constant 0 : index
    %c0_3 = arith.constant 0 : index
    %4 = vector.load %arg3[%c0_2, %c0_3] : memref<1x512xf32, #tpu.memory_space<vmem>>, vector<1x512xf32>
    %cst = arith.constant 0.000000e+00 : f32
    %5 = vector.broadcast %cst : f32 to vector<1x512xf32>
    %6 = arith.cmpf one, %4, %5 : vector<1x512xf32>
    %7 = arith.subf %3, %4 : vector<1x512xf32>
    %8 = math.absf %7 : vector<1x512xf32>
    %cst_4 = arith.constant 0.000000e+00 : f32
    %9 = vector.broadcast %cst_4 : f32 to vector<1x512xf32>
    %10 = arith.select %6, %8, %9 : vector<1x512xi1>, vector<1x512xf32>
    %11 = arith.extui %6 : vector<1x512xi1> to vector<1x512xi32>
    %12 = arith.sitofp %11 : vector<1x512xi32> to vector<1x512xf32>
    %c0_5 = arith.constant 0 : index
    %c0_6 = arith.constant 0 : index
    %13 = vector.load %arg6[%c0_5, %c0_6] : memref<1x512xf32, #tpu.memory_space<vmem>>, vector<1x512xf32>
    %14 = arith.addf %13, %10 : vector<1x512xf32>
    %c0_7 = arith.constant 0 : index
    %c0_8 = arith.constant 0 : index
    %15 = vector.load %arg6[%c0_7, %c0_8] : memref<1x512xf32, #tpu.memory_space<vmem>>, vector<1x512xf32>
    tpu.vector_store %arg6[%c0_7, %c0_8], %14 {strides = array<i32>} : memref<1x512xf32, #tpu.memory_space<vmem>>, vector<1x512xf32>,
    %c0_9 = arith.constant 0 : index
    %c0_10 = arith.constant 0 : index
    %16 = vector.load %arg7[%c0_9, %c0_10] : memref<1x512xf32, #tpu.memory_space<vmem>>, vector<1x512xf32>
    %17 = arith.addf %16, %12 : vector<1x512xf32>
    %c0_11 = arith.constant 0 : index
    %c0_12 = arith.constant 0 : index
    %18 = vector.load %arg7[%c0_11, %c0_12] : memref<1x512xf32, #tpu.memory_space<vmem>>, vector<1x512xf32>
    tpu.vector_store %arg7[%c0_11, %c0_12], %17 {strides = array<i32>} : memref<1x512xf32, #tpu.memory_space<vmem>>, vector<1x512xf32>,
    %c0_i32_13 = arith.constant 0 : i32
    %19 = arith.cmpi eq, %arg1, %c0_i32_13 : i32
    %20 = arith.extui %19 : i1 to i32
    %c0_i32_14 = arith.constant 0 : i32
    %21 = arith.cmpi ne, %20, %c0_i32_14 : i32
    scf.if %21 {
      %c0_15 = arith.constant 0 : index
      %c0_16 = arith.constant 0 : index
      %22 = vector.load %arg6[%c0_15, %c0_16] : memref<1x512xf32, #tpu.memory_space<vmem>>, vector<1x512xf32>
      %23 = vector.shape_cast %22 : vector<1x512xf32> to vector<1x1x512xf32>
      %cst_17 = arith.constant dense<0.000000e+00> : vector<1xf32>
      %24 = vector.multi_reduction <add>, %23, %cst_17 [1, 2] : vector<1x1x512xf32> to vector<1xf32>
      %25 = vector.shape_cast %24 : vector<1xf32> to vector<1x1x1xf32>
      %26 = vector.extract %25[0, 0, 0] : f32 from vector<1x1x1xf32>
      %27 = vector.broadcast %26 : f32 to vector<1x8x128xf32>
      %c0_18 = arith.constant 0 : index
      %c0_19 = arith.constant 0 : index
      %c0_20 = arith.constant 0 : index
      %28 = vector.load %arg4[%c0_18, %c0_19, %c0_20] : memref<1x8x128xf32, #tpu.memory_space<vmem>>, vector<1x8x128xf32>
      tpu.vector_store %arg4[%c0_18, %c0_19, %c0_20], %27 {strides = array<i32>} : memref<1x8x128xf32, #tpu.memory_space<vmem>>, vector<1x8x128xf32>,
      %c0_21 = arith.constant 0 : index
      %c0_22 = arith.constant 0 : index
      %29 = vector.load %arg7[%c0_21, %c0_22] : memref<1x512xf32, #tpu.memory_space<vmem>>, vector<1x512xf32>
      %30 = vector.shape_cast %29 : vector<1x512xf32> to vector<1x1x512xf32>
      %cst_23 = arith.constant dense<0.000000e+00> : vector<1xf32>
      %31 = vector.multi_reduction <add>, %30, %cst_23 [1, 2] : vector<1x1x512xf32> to vector<1xf32>
      %32 = vector.shape_cast %31 : vector<1xf32> to vector<1x1x1xf32>
      %33 = vector.extract %32[0, 0, 0] : f32 from vector<1x1x1xf32>
      %34 = vector.broadcast %33 : f32 to vector<1x8x128xf32>
      %c0_24 = arith.constant 0 : index
      %c0_25 = arith.constant 0 : index
      %c0_26 = arith.constant 0 : index
      %35 = vector.load %arg5[%c0_24, %c0_25, %c0_26] : memref<1x8x128xf32, #tpu.memory_space<vmem>>, vector<1x8x128xf32>
      tpu.vector_store %arg5[%c0_24, %c0_25, %c0_26], %34 {strides = array<i32>} : memref<1x8x128xf32, #tpu.memory_space<vmem>>, vector<1x8x128xf32>,
    } else {
    }
    return
  }
  func.func @transform_0(%arg0: i32, %arg1: i32) -> (i32, i32) {
    %c1_i32 = arith.constant 1 : i32
    %0 = arith.muli %arg0, %c1_i32 : i32
    %1 = arith.addi %0, %arg1 : i32
    %c0_i32 = arith.constant 0 : i32
    %2 = arith.minsi %1, %c0_i32 : i32
    %c0_i32_0 = arith.constant 0 : i32
    %c0_i32_1 = arith.constant 0 : i32
    return %2, %c0_i32_0 : i32, i32
  }
  func.func @transform_1(%arg0: i32, %arg1: i32) -> (i32, i32) {
    %c1_i32 = arith.constant 1 : i32
    %0 = arith.muli %arg0, %c1_i32 : i32
    %1 = arith.addi %0, %arg1 : i32
    %c0_i32 = arith.constant 0 : i32
    %2 = arith.minsi %1, %c0_i32 : i32
    %c0_i32_0 = arith.constant 0 : i32
    %c0_i32_1 = arith.constant 0 : i32
    return %2, %c0_i32_0 : i32, i32
  }
  func.func @transform_2(%arg0: i32, %arg1: i32) -> (i32, i32, i32) {
    %c0_i32 = arith.constant 0 : i32
    %c0_i32_0 = arith.constant 0 : i32
    %c0_i32_1 = arith.constant 0 : i32
    return %arg0, %c0_i32, %c0_i32_0 : i32, i32, i32
  }
  func.func @transform_3(%arg0: i32, %arg1: i32) -> (i32, i32, i32) {
    %c0_i32 = arith.constant 0 : i32
    %c0_i32_0 = arith.constant 0 : i32
    %c0_i32_1 = arith.constant 0 : i32
    return %arg0, %c0_i32, %c0_i32_0 : i32, i32, i32
  }
}

</mosaic_0001>

<bundles_post_ra>
// kernel: squeeze.5
= control target key start
LH: loop header
LB: loop body
LE: loop exit
PB: predicated region body
PF: predicated region fallthrough
CT: control target
= control target key end

     0   :  { %s89_s8 = smov 112   ;;  %s90_s11 = smov 80   ;;  %vm3_vm0 = vcmask 130048   ;;  %vm9_vm1 = vcmask 1048448   ;;  %vm15_vm2 = vcmask 917248   ;;  %vm21_vm3 = vcmask 786048   ;;  %s142_s0 = inlined_call_operand.vmem [shape: f32[2,1,16,16], index: 0, kind: input, shape index: {}]   ;;  %s143_s1 = inlined_call_operand.vmem [shape: f32[1,512], index: 1, kind: output, shape index: {}]  }
   0x1   :  { %v72_v0 = vld [vmem:[%s142_s0 + $0x7] ss:$8 sm:$0xf]   ;;  %v74_v1 = vld [vmem:[%s142_s0 + $0x5] ss:$8 sm:$0xf]  }
   0x2   :  { %7 = vrot.lane.b32.xlu0 %v72_v0, %s89_s8  ;;  %19 = vrot.lane.b32.xlu1 %v74_v1, %s90_s11  ;;  %v73_v2 = vld [vmem:[%s142_s0 + $0x6] ss:$8 sm:$0xf]   ;;  %v75_v3 = vld [vmem:[%s142_s0 + $0x4] ss:$8 sm:$0xf]  }
   0x3   :  { %s91_s16 = smov 96   ;;  %v2_v4 = vld [vmem:[%s142_s0] ss:$8 sm:$0xf]   ;;  %s92_s19 = smov 64   ;;  %vm27_vm4 = vcmask 654848  }
   0x4   :  { %v76_v5 = vld [vmem:[%s142_s0 + $0x3] ss:$8 sm:$0xf]   ;;  %4 = vst.msk [vmem:[#allocation0] ss:$8 sm:$0xf] %vm3_vm0, %v2_v4  }
   0x5   :  { %v77_v6 = vld [vmem:[%s142_s0 + $0x2] ss:$8 sm:$0xf]   ;;  %s93_s24 = smov 48   ;;  %s94_s25 = smov 32   ;;  %vm33_vm5 = vcmask 523648  }
   0x6   :  { %13 = vrot.lane.b32.xlu0 %v73_v2, %s91_s16  ;;  %25 = vrot.lane.b32.xlu1 %v75_v3, %s92_s19  ;;  %v78_v7 = vld [vmem:[%s142_s0 + $0x1] ss:$8 sm:$0xf]   ;;  %s95_s0 = smov 16   ;;  %vm39_vm6 = vcmask 392448   ;;  %vm45_vm7 = vcmask 261248  }
   0xa   :  { %31 = vrot.lane.b32.xlu0 %v76_v5, %s93_s24  ;;  %37 = vrot.lane.b32.xlu1 %v77_v6, %s94_s25 }
   0xe   :  { %43 = vrot.lane.b32.xlu0 %v78_v7, %s95_s0 }
  0x74   :  { %v8_v8 = vpop.permute.xlu0 %7   ;;  %v20_v9 = vpop.permute.xlu1 %19  }
  0x75   :  { %10 = vst.msk [vmem:[#allocation0] ss:$8 sm:$0xf] %vm9_vm1, %v8_v8  }
  0x78   :  { %v14_v10 = vpop.permute.xlu0 %13   ;;  %v26_v11 = vpop.permute.xlu1 %25  }
  0x79   :  { %16 = vst.msk [vmem:[#allocation0] ss:$8 sm:$0xf] %vm15_vm2, %v14_v10  }
  0x7a   :  { %22 = vst.msk [vmem:[#allocation0] ss:$8 sm:$0xf] %vm21_vm3, %v20_v9  }
  0x7b   :  { %28 = vst.msk [vmem:[#allocation0] ss:$8 sm:$0xf] %vm27_vm4, %v26_v11  }
  0x7c   :  { %v32_v12 = vpop.permute.xlu0 %31   ;;  %v38_v13 = vpop.permute.xlu1 %37  }
  0x7d   :  { %34 = vst.msk [vmem:[#allocation0] ss:$8 sm:$0xf] %vm33_vm5, %v32_v12  }
  0x7e   :  { %40 = vst.msk [vmem:[#allocation0] ss:$8 sm:$0xf] %vm39_vm6, %v38_v13  }
  0x80   :  { %v44_v14 = vpop.permute.xlu0 %43  }
  0x81   :  { %46 = vst.msk [vmem:[#allocation0] ss:$8 sm:$0xf] %vm45_vm7, %v44_v14  }
  0x88   :  { %v50_v15 = vld [vmem:[#allocation0] sm:$0x1]  ;;  %v54_v16 = vld [vmem:[#allocation0 + $0x8] sm:$0x1]  ;;  %v59_v17 = vld [vmem:[#allocation0 + $0x10] sm:$0x1] }
  0x89   :  { %52 = vst [vmem:[%s143_s1] sm:$0x1] %v50_v15  ;;  %79 = vst [vmem:[%s143_s1 + $0x1] sm:$0x1] %v54_v16  ;;  %v65_v18 = vld [vmem:[#allocation0 + $0x18] sm:$0x1] }
  0x8a   :  { %80 = vst [vmem:[%s143_s1 + $0x2] sm:$0x1] %v59_v17  ;;  %81 = vst [vmem:[%s143_s1 + $0x3] sm:$0x1] %v65_v18 }

// kernel: squeeze.4
= control target key start
LH: loop header
LB: loop body
LE: loop exit
PB: predicated region body
PF: predicated region fallthrough
CT: control target
= control target key end

     0   :  { %2 = vsyncpa [#allocation1], 0  ;;  %s118_s6 = smov [#allocation0]   ;;  %s160_s0 = inlined_call_operand.hbm [shape: f32[2,1,16,16], index: 0, kind: input, shape index: {}]   ;;  %s161_s1 = inlined_call_operand.vmem [shape: f32[1,512], index: 1, kind: output, shape index: {}]  }
   0x1   :  { %s7_s7 = sshll.u32 %s118_s6, 4  ;;  %s94_s10 = scalar_lea.hbm %s160_s0, 512  ;;  %s8_s7 = int_to_ptr.vmem [resolvable:$true] %s7_s7 }
   0x2   :  { %p95_p0 = scmp.ne.s32.totalorder %s160_s0, %s94_s10  ;;  %p98_p1 = scmp.lt.u32.totalorder %s94_s10, %s160_s0 }
   0x4   :  { %p100_p2 = pnand %p98_p1, %p95_p0 }
   0x6   :  { %103 = shalt.err (!%p100_p2)
}
   0x7   :  { %s104_s15 = scalar_lea.vmem %s8_s7, 512  ;;  %p109_p4 = scmp.lt.s32.totalorder %s8_s7, %s8_s7 }
   0x8   :  { %p105_p3 = scmp.ne.s32.totalorder %s8_s7, %s104_s15  ;;  %p110_p5 = scmp.lt.s32.totalorder %s104_s15, %s104_s15 }
   0xa   :  { %p111_p6 = por %p110_p5, %p109_p4 }
   0xc   :  { %p112_p7 = pnand %p111_p6, %p105_p3 }
   0xe   :  { %115 = shalt.err (!%p112_p7)
}
   0xf   :  { %10 = dma.hbm_to_vmem [thread:$0]  %s160_s0, 512, %s8_s7, [#allocation1]  }
  0x10   :  { %116 = dma.done.wait [#allocation1], 512  }
  0x11   :  { %117 = vsyncadd [#allocation1], 4294966784  ;;  %v16_v0 = vld [vmem:[#allocation0 + $0x7] ss:$8 sm:$0xf]   ;;  %s119_s0 = smov 112  }
  0x12   :  { %v28_v1 = vld [vmem:[#allocation0 + $0x5] ss:$8 sm:$0xf]   ;;  %17 = vrot.lane.b32.xlu0 %v16_v0, %s119_s0  ;;  %s120_s18 = smov 80   ;;  %vm13_vm0 = vcmask 130048   ;;  %s121_s19 = smov 96  }
  0x13   :  { %29 = vrot.lane.b32.xlu1 %v28_v1, %s120_s18  ;;  %v22_v2 = vld [vmem:[#allocation0 + $0x6] ss:$8 sm:$0xf]   ;;  %v34_v3 = vld [vmem:[#allocation0 + $0x4] ss:$8 sm:$0xf]  }
  0x14   :  { %v12_v4 = vld [vmem:[#allocation0] ss:$8 sm:$0xf]   ;;  %s122_s20 = smov 64   ;;  %s123_s21 = smov 48   ;;  %vm19_vm1 = vcmask 1048448  }
  0x15   :  { %14 = vst.msk [vmem:[#allocation2] ss:$8 sm:$0xf] %vm13_vm0, %v12_v4   ;;  %v40_v5 = vld [vmem:[#allocation0 + $0x3] ss:$8 sm:$0xf]  }
  0x16   :  { %23 = vrot.lane.b32.xlu0 %v22_v2, %s121_s19  ;;  %v46_v6 = vld [vmem:[#allocation0 + $0x2] ss:$8 sm:$0xf]   ;;  %s124_s22 = smov 32   ;;  %s125_s23 = smov 16   ;;  %vm25_vm2 = vcmask 917248  }
  0x17   :  { %35 = vrot.lane.b32.xlu1 %v34_v3, %s122_s20  ;;  %v52_v7 = vld [vmem:[#allocation0 + $0x1] ss:$8 sm:$0xf]   ;;  %vm31_vm3 = vcmask 786048   ;;  %vm37_vm4 = vcmask 654848   ;;  %vm43_vm5 = vcmask 523648  }
  0x18   :  { %vm49_vm6 = vcmask 392448   ;;  %vm55_vm7 = vcmask 261248  }
  0x1a   :  { %41 = vrot.lane.b32.xlu0 %v40_v5, %s123_s21 }
  0x1b   :  { %47 = vrot.lane.b32.xlu1 %v46_v6, %s124_s22 }
  0x1e   :  { %53 = vrot.lane.b32.xlu0 %v52_v7, %s125_s23 }
  0x84   :  { %v18_v8 = vpop.permute.xlu0 %17  }
  0x85   :  { %v30_v9 = vpop.permute.xlu1 %29   ;;  %20 = vst.msk [vmem:[#allocation2] ss:$8 sm:$0xf] %vm19_vm1, %v18_v8  }
  0x88   :  { %v24_v10 = vpop.permute.xlu0 %23  }
  0x89   :  { %v36_v11 = vpop.permute.xlu1 %35   ;;  %26 = vst.msk [vmem:[#allocation2] ss:$8 sm:$0xf] %vm25_vm2, %v24_v10  }
  0x8a   :  { %32 = vst.msk [vmem:[#allocation2] ss:$8 sm:$0xf] %vm31_vm3, %v30_v9  }
  0x8b   :  { %38 = vst.msk [vmem:[#allocation2] ss:$8 sm:$0xf] %vm37_vm4, %v36_v11  }
  0x8c   :  { %v42_v12 = vpop.permute.xlu0 %41  }
  0x8d   :  { %v48_v13 = vpop.permute.xlu1 %47   ;;  %44 = vst.msk [vmem:[#allocation2] ss:$8 sm:$0xf] %vm43_vm5, %v42_v12  }
  0x8e   :  { %50 = vst.msk [vmem:[#allocation2] ss:$8 sm:$0xf] %vm49_vm6, %v48_v13  }
  0x90   :  { %v54_v14 = vpop.permute.xlu0 %53  }
  0x91   :  { %56 = vst.msk [vmem:[#allocation2] ss:$8 sm:$0xf] %vm55_vm7, %v54_v14  }
  0x98   :  { %v60_v15 = vld [vmem:[#allocation2] sm:$0x1]  ;;  %v64_v16 = vld [vmem:[#allocation2 + $0x8] sm:$0x1]  ;;  %v69_v17 = vld [vmem:[#allocation2 + $0x10] sm:$0x1] }
  0x99   :  { %62 = vst [vmem:[%s161_s1] sm:$0x1] %v60_v15  ;;  %83 = vst [vmem:[%s161_s1 + $0x1] sm:$0x1] %v64_v16  ;;  %v75_v18 = vld [vmem:[#allocation2 + $0x18] sm:$0x1] }
  0x9a   :  { %84 = vst [vmem:[%s161_s1 + $0x2] sm:$0x1] %v69_v17  ;;  %85 = vst [vmem:[%s161_s1 + $0x3] sm:$0x1] %v75_v18 }
  0x9b   :  { %80 = vsyncpa [#allocation1], 1 }

// kernel: l1_masked_loss_depth.1
= control target key start
LH: loop header
LB: loop body
LE: loop exit
PB: predicated region body
PF: predicated region fallthrough
CT: control target
= control target key end

     0   :  { %v71_v0 = vlaneseq  ;;  %v205_v4 = vmov 0.0   ;;  %vm120_vm2 = vcmask 1040384   ;;  %s246_s0 = inlined_call_operand.vmem [shape: f32[1,512], index: 0, kind: input, shape index: {}]   ;;  %s247_s1 = inlined_call_operand.vmem [shape: f32[1,512], index: 1, kind: input, shape index: {}]   ;;  %s248_s2 = inlined_call_operand.vmem [shape: f32[1,8,128], index: 2, kind: output, shape index: {0}]   ;;  %s249_s3 = inlined_call_operand.vmem [shape: f32[1,8,128], index: 3, kind: output, shape index: {1}]  }
   0x1   :  { %v77_v1 = vld [vmem:[%s246_s0] sm:$0xf] }
   0x2   :  { %v78_v2 = vld [vmem:[%s247_s1] sm:$0xf]  ;;  %vm73_vm0 = vcmp.lt.s32.totalorder %v71_v0, 512  ;;  %v101_v12 = vshrl.u32 %v71_v0, 7 }
   0x3   :  { %v80_v3 = vsub.f32 %v77_v1, %v78_v2  ;;  %75 = vst.msk [vmem:[#allocation2] sm:$0xf] %vm73_vm0, %v205_v4  ;;  %76 = vst.msk [vmem:[#allocation3] sm:$0xf] %vm73_vm0, %v205_v4  ;;  %vm79_vm1 = vcmp.ne.f32.partialorder %v78_v2, 0.0 }
   0x4   :  { %v199_v7 = vsel %vm79_vm1, 1.0, %v205_v4  ;;  %v102_v13 = vsub.s32 0, %v101_v12  ;;  %v106_v14 = vsub.s32 1, %v101_v12  ;;  %v110_v15 = vsub.s32 2, %v101_v12 }
   0x5   :  { %v81_v5 = vand.u32 2147483647, %v80_v3  ;;  %v114_v16 = vsub.s32 3, %v101_v12 }
   0x7   :  { %v82_v6 = vsel %vm79_vm1, %v81_v5, 0.0 }
   0xa   :  { %v85_v8 = vld [vmem:[#allocation2] sm:$0xf]  ;;  %v92_v9 = vld [vmem:[#allocation3] sm:$0xf] }
   0xb   :  { %v86_v10 = vadd.f32 %v85_v8, %v82_v6  ;;  %v93_v11 = vadd.f32 %v199_v7, %v92_v9 }
   0xd   :  { %91 = vst.msk [vmem:[#allocation2] sm:$0xf] %vm73_vm0, %v86_v10  ;;  %94 = vst.msk [vmem:[#allocation3] sm:$0xf] %vm73_vm0, %v93_v11 }
  0x14   :  { %v98_v17 = vld [vmem:[#allocation2] sm:$0xf]  ;;  %v139_v18 = vld [vmem:[#allocation3] sm:$0xf] }
  0x15   :  { %v103_v19 = vrot.slane %v98_v17, %v102_v13  ;;  %v107_v20 = vrot.slane %v98_v17, %v106_v14  ;;  %v111_v21 = vrot.slane %v98_v17, %v110_v15  ;;  %v115_v22 = vrot.slane %v98_v17, %v114_v16 }
  0x16   :  { %v144_v23 = vrot.slane %v139_v18, %v102_v13  ;;  %v148_v24 = vrot.slane %v139_v18, %v106_v14  ;;  %v152_v25 = vrot.slane %v139_v18, %v110_v15  ;;  %v156_v29 = vrot.slane %v139_v18, %v114_v16 }
  0x17   :  { %v121_v26 = vsel %vm120_vm2, %v103_v19, 0.0  ;;  %v122_v27 = vsel %vm120_vm2, %v107_v20, 0.0  ;;  %v124_v28 = vsel %vm120_vm2, %v111_v21, 0.0  ;;  %v126_v34 = vsel %vm120_vm2, %v115_v22, 0.0 }
  0x18   :  { %v123_v30 = vadd.f32 %v122_v27, %v121_v26  ;;  %v161_v31 = vsel %vm120_vm2, %v144_v23, 0.0  ;;  %v162_v32 = vsel %vm120_vm2, %v148_v24, 0.0  ;;  %v164_v33 = vsel %vm120_vm2, %v152_v25, 0.0 }
  0x19   :  { %v163_v35 = vadd.f32 %v162_v32, %v161_v31  ;;  %v166_v38 = vsel %vm120_vm2, %v156_v29, 0.0 }
  0x1a   :  { %v125_v36 = vadd.f32 %v124_v28, %v123_v30 }
  0x1b   :  { %v165_v37 = vadd.f32 %v164_v33, %v163_v35 }
  0x1c   :  { %v127_v39 = vadd.f32 %v126_v34, %v125_v36 }
  0x1d   :  { %v167_v40 = vadd.f32 %v166_v38, %v165_v37 }
  0x1e   :  { %128 = vadd.xlane.f32.xlu0 %v127_v39 }
  0x22   :  { %168 = vadd.xlane.f32.xlu0 %v167_v40 }
  0xab   :  { %v129_v41 = vpop.xlane.xlu0 %128 }
  0xac   :  { %v130_v42 = vrot.slane %v129_v41, 4 }
  0xae   :  { %v131_v43 = vadd.f32 %v130_v42, %v129_v41 }
  0xaf   :  { %v169_v44 = vpop.xlane.xlu0 %168 }
  0xb0   :  { %v132_v45 = vrot.slane %v131_v43, 2  ;;  %v170_v46 = vrot.slane %v169_v44, 4 }
  0xb2   :  { %v171_v47 = vadd.f32 %v170_v46, %v169_v44  ;;  %v133_v48 = vadd.f32 %v132_v45, %v131_v43 }
  0xb4   :  { %v172_v49 = vrot.slane %v171_v47, 2  ;;  %v134_v50 = vrot.slane %v133_v48, 1 }
  0xb6   :  { %v173_v51 = vadd.f32 %v172_v49, %v171_v47  ;;  %v135_v52 = vadd.f32 %v134_v50, %v133_v48 }
  0xb8   :  { %200 = vpush %v135_v52  ;;  %v174_v53 = vrot.slane %v173_v51, 1 }
  0xba   :  { %v175_v54 = vadd.f32 %v174_v53, %v173_v51 }
  0xbc   :  { %202 = vpush %v175_v54 }
  0xe9   :  { %s201_s0 = spop %200 }
  0xea   :  { %v137_v55 = vstv %s201_s0 }
  0xeb   :  { %138 = vst [vmem:[%s248_s2] sm:$0xff] %v137_v55 }
  0xed   :  { %s203_s17 = spop %202 }
  0xee   :  { %v177_v56 = vstv %s203_s17 }
  0xef   :  { %178 = vst [vmem:[%s249_s3] sm:$0xff] %v177_v56 }

</bundles_post_ra>
